<compile_context>
chip_gen: v5e
topology: v5e:2x2
jax: 0.10.0
libtpu: 0.0.40
codegen_flags: <defaults>
</compile_context>

<pallas_src>
import functools

import jax
import jax.numpy as jnp
from jax.experimental import pallas as pl
from jax.experimental.pallas import tpu as pltpu

PRED_H1 = 64   # prediction head hidden sizes are fixed by the PyTorch module
PRED_H2 = 32
OUT_W = 128    # lane-dense packed width for the fused-head matmul / output slab


def _round_up(x, m):
    return (x + m - 1) // m * m


def _actor_critic_kernel(x_ref, wt_ref, wh_ref, wtail_ref, b_ref, out_ref, *,
                         obs_dim, hidden, act_dim, w2_off):
    f32 = jnp.float32
    bf16 = jnp.bfloat16

    x = x_ref[...]                                             # (tb, obs_dim) bf16

    # unpack packed operands (static, packed-sublane-aligned slices -> views)
    w1 = wt_ref[0:obs_dim, :]                                  # (obs_dim, hidden) bf16
    w2 = wt_ref[w2_off:w2_off + hidden, :]                     # (hidden, hidden)  bf16
    b1 = b_ref[0:1, 0:hidden]                                  # f32
    b2 = b_ref[1:2, 0:hidden]
    bh = b_ref[2:3, 0:OUT_W]                                   # fused head bias
    bq2 = b_ref[3:4, 0:PRED_H2]
    bq3 = b_ref[4:5, 0:1]

    # ---- fc trunk: Linear -> ReLU -> Dropout(eval identity) -> Linear -> ReLU ----
    # bf16 MXU operands, f32 accumulation; elementwise math stays f32 (v5e-safe).
    h = jnp.maximum(jnp.dot(x, w1, preferred_element_type=f32) + b1, 0.0)
    # TODO(synk): training-mode dropout (stochastic mask via pltpu.prng_*) not implemented.
    h = jnp.maximum(jnp.dot(h.astype(bf16), w2, preferred_element_type=f32) + b2, 0.0)

    # ---- fused heads: one (hidden, 128) matmul covering policy | value | pred-layer-1 ----
    z = jnp.dot(h.astype(bf16), wh_ref[...], preferred_element_type=f32) + bh   # (tb, OUT_W)

    # policy head: softmax over lanes 0..act_dim-1
    logits = z[:, 0:act_dim]
    m = jnp.max(logits, axis=-1, keepdims=True)
    e = jnp.exp(logits - m)
    inv = pl.reciprocal(jnp.sum(e, axis=-1, keepdims=True), approx=True)   # EUP slot
    policy = e * inv

    # value head: single lane at index act_dim (bias already folded in via bh)
    value = z[:, act_dim:act_dim + 1]

    # prediction head tail: ReLU -> Linear(64,32) -> ReLU -> (32,1) as VPU mul + lane reduce
    q = jnp.maximum(z[:, act_dim + 1:act_dim + 1 + PRED_H1], 0.0)
    wq2 = wtail_ref[0:PRED_H1, :]                              # (64, 32) bf16
    q = jnp.maximum(jnp.dot(q.astype(bf16), wq2, preferred_element_type=f32) + bq2, 0.0)
    wq3_row = wtail_ref[PRED_H1:PRED_H1 + 1, :].astype(f32)    # (1, 32): wq3 transposed
    pred = jnp.sum(q * wq3_row, axis=-1, keepdims=True) + bq3  # VPU mul + XLU reduce

    # ---- direct slice stores; pad lanes never written (wrapper slices them off) ----
    out_ref[:, 0:act_dim] = policy.astype(out_ref.dtype)
    out_ref[:, act_dim:act_dim + 1] = value.astype(out_ref.dtype)
    out_ref[:, act_dim + 1:act_dim + 2] = pred.astype(out_ref.dtype)


def _pack_params(params, obs_dim, act_dim, hidden, op_dtype=jnp.bfloat16):
    """Pack the 14 small weight/bias tensors into 4 lane/sublane-friendly operands."""
    # trunk weights stacked along rows, w2 offset aligned to bf16 packed sublanes (16)
    w2_off = _round_up(obs_dim, 16)
    trunk_rows = w2_off + _round_up(hidden, 16)
    w_trunk = jnp.zeros((trunk_rows, hidden), op_dtype)
    w_trunk = w_trunk.at[0:obs_dim, :].set(params["w1"].astype(op_dtype))
    w_trunk = w_trunk.at[w2_off:w2_off + hidden, :].set(params["w2"].astype(op_dtype))

    # fused head weights lane-padded to OUT_W columns: [wp | wv | wq1 | 0]
    w_heads = jnp.zeros((hidden, OUT_W), op_dtype)
    w_heads = w_heads.at[:, 0:act_dim].set(params["wp"].astype(op_dtype))
    w_heads = w_heads.at[:, act_dim:act_dim + 1].set(params["wv"].astype(op_dtype))
    w_heads = w_heads.at[:, act_dim + 1:act_dim + 1 + PRED_H1].set(params["wq1"].astype(op_dtype))

    # prediction tail: wq2 rows 0..63, wq3 transposed into row 64 (aligned), pad to 80 rows
    w_tail = jnp.zeros((PRED_H1 + 16, PRED_H2), op_dtype)
    w_tail = w_tail.at[0:PRED_H1, :].set(params["wq2"].astype(op_dtype))
    w_tail = w_tail.at[PRED_H1, :].set(params["wq3"][:, 0].astype(op_dtype))

    # all biases packed into one f32 (8, bias_w) array; wide enough for hidden > 128
    bias_w = _round_up(max(hidden, OUT_W), 128)
    biases = jnp.zeros((8, bias_w), jnp.float32)
    biases = biases.at[0, 0:hidden].set(params["b1"][0])
    biases = biases.at[1, 0:hidden].set(params["b2"][0])
    biases = biases.at[2, 0:act_dim].set(params["bp"][0])
    biases = biases.at[2, act_dim].set(params["bv"][0, 0])
    biases = biases.at[2, act_dim + 1:act_dim + 1 + PRED_H1].set(params["bq1"][0])
    biases = biases.at[3, 0:PRED_H2].set(params["bq2"][0])
    biases = biases.at[4, 0].set(params["bq3"][0, 0])
    return w_trunk, w_heads, w_tail, biases, w2_off


def actor_critic_forward(x, params, *, block_rows=1024, out_dtype=jnp.bfloat16):
    """Fused ActorCritic forward pass via one pallas_call with a batch grid."""
    batch, obs_dim = x.shape
    hidden = params["w1"].shape[1]
    act_dim = params["wp"].shape[1]
    assert act_dim + 1 + PRED_H1 <= OUT_W, "act_dim too large for packed head width"

    w_trunk, w_heads, w_tail, biases, w2_off = _pack_params(params, obs_dim, act_dim, hidden)

    # batch tiling: weights stay VMEM-resident, x/out tiles pipeline over the grid.
    tb = max(8, min(_round_up(block_rows, 8), _round_up(batch, 8)))
    padded = _round_up(batch, tb)
    # keep >= 2 grid steps when possible so v7x's 2 TensorCores both get work
    if padded // tb < 2 and batch > 8:
        tb = _round_up((padded + 1) // 2, 8)
        padded = _round_up(batch, tb)
    if padded != batch:
        x = jnp.pad(x, ((0, padded - batch), (0, 0)))
    grid = (padded // tb,)

    x_op = x.astype(jnp.bfloat16)   # halve the input DMA stream; accumulation stays f32

    kernel = functools.partial(
        _actor_critic_kernel, obs_dim=obs_dim, hidden=hidden, act_dim=act_dim, w2_off=w2_off)

    flops = 2 * padded * (obs_dim * hidden + hidden * hidden + hidden * OUT_W
                          + PRED_H1 * PRED_H2 + PRED_H2)
    bytes_accessed = (x_op.size * 2
                      + (w_trunk.size + w_heads.size + w_tail.size) * 2
                      + biases.size * 4
                      + padded * OUT_W * jnp.dtype(out_dtype).itemsize)
    transcendentals = padded * (act_dim + 1)   # exp per policy lane + approx recip

    out = pl.pallas_call(
        kernel,
        out_shape=jax.ShapeDtypeStruct((padded, OUT_W), out_dtype),
        grid=grid,
        in_specs=[
            pl.BlockSpec((tb, obs_dim), lambda i: (i, 0)),        # x tiles over batch
            pl.BlockSpec(w_trunk.shape, lambda i: (0, 0)),        # resident weights
            pl.BlockSpec(w_heads.shape, lambda i: (0, 0)),
            pl.BlockSpec(w_tail.shape, lambda i: (0, 0)),
            pl.BlockSpec(biases.shape, lambda i: (0, 0)),
        ],
        out_specs=pl.BlockSpec((tb, OUT_W), lambda i: (i, 0)),
        compiler_params=pltpu.CompilerParams(dimension_semantics=("parallel",)),
        cost_estimate=pl.CostEstimate(flops=flops,
                                      transcendentals=transcendentals,
                                      bytes_accessed=bytes_accessed),
    )(x_op, w_trunk, w_heads, w_tail, biases)

    out = out[:batch].astype(jnp.float32)
    policy = out[:, 0:act_dim]
    value = out[:, act_dim:act_dim + 1]
    pred = out[:, act_dim + 1:act_dim + 2]
    return policy, value, pred


def init_params(key, obs_dim, act_dim, hidden_size):
    """Deterministic PyTorch-Linear-style init: U(-1/sqrt(fan_in), 1/sqrt(fan_in))."""
    def linear(key, fan_in, fan_out):
        kw, kb = jax.random.split(key)
        bound = 1.0 / jnp.sqrt(fan_in)
        w = jax.random.uniform(kw, (fan_in, fan_out), jnp.float32, -bound, bound)
        b = jax.random.uniform(kb, (1, fan_out), jnp.float32, -bound, bound)
        return w, b

    keys = jax.random.split(key, 7)
    w1, b1 = linear(keys[0], obs_dim, hidden_size)
    w2, b2 = linear(keys[1], hidden_size, hidden_size)
    wp, bp = linear(keys[2], hidden_size, act_dim)
    wv, bv = linear(keys[3], hidden_size, 1)
    wq1, bq1 = linear(keys[4], hidden_size, PRED_H1)
    wq2, bq2 = linear(keys[5], PRED_H1, PRED_H2)
    wq3, bq3 = linear(keys[6], PRED_H2, 1)
    return dict(
        w1=w1, b1=b1, w2=w2, b2=b2,
        wp=wp, bp=bp, wv=wv, bv=bv,
        wq1=wq1, bq1=bq1, wq2=wq2, bq2=bq2, wq3=wq3, bq3=bq3,
    )


def reference_forward(x, p):
    """Pure-JAX reference for correctness check."""
    h = jnp.maximum(x @ p["w1"] + p["b1"], 0.0)
    h = jnp.maximum(h @ p["w2"] + p["b2"], 0.0)
    logits = h @ p["wp"] + p["bp"]
    policy = jax.nn.softmax(logits, axis=-1)
    value = h @ p["wv"] + p["bv"]
    q = jnp.maximum(h @ p["wq1"] + p["bq1"], 0.0)
    q = jnp.maximum(q @ p["wq2"] + p["bq2"], 0.0)
    pred = q @ p["wq3"] + p["bq3"]
    return policy, value, pred


if __name__ == "__main__":
    obs_dim, act_dim, hidden_size, batch = 16, 8, 32, 8

    key = jax.random.PRNGKey(0)
    k_x, k_p = jax.random.split(key)
    x = jax.random.normal(k_x, (batch, obs_dim), jnp.float32)
    params = init_params(k_p, obs_dim, act_dim, hidden_size)

    policy, value, pred = actor_critic_forward(x, params)
    jax.block_until_ready((policy, value, pred))

    # sanity check against plain-JAX f32 reference
    policy_r, value_r, pred_r = reference_forward(x, params)
    # bf16 MXU operands + bf16 output slab + EUP approx reciprocal -> looser tolerances
    assert jnp.allclose(policy, policy_r, atol=2e-2), "policy mismatch"
    assert jnp.allclose(jnp.sum(policy, axis=-1), 1.0, atol=2e-2), "softmax rows must sum to ~1"
    assert jnp.allclose(value, value_r, atol=3e-2), "value mismatch"
    assert jnp.allclose(pred, pred_r, atol=3e-2), "prediction mismatch"

    print("KERNEL_OK")
</pallas_src>

<mosaic_0001>
module attributes {stable_mosaic.version = 11 : i64} {
  func.func @_actor_critic_kernel(%arg0: i32, %arg1: memref<8x16xbf16, #tpu.memory_space<vmem>>, %arg2: memref<48x32xbf16, #tpu.memory_space<vmem>>, %arg3: memref<32x128xbf16, #tpu.memory_space<vmem>>, %arg4: memref<80x32xbf16, #tpu.memory_space<vmem>>, %arg5: memref<8x128xf32, #tpu.memory_space<vmem>>, %arg6: memref<8x128xbf16, #tpu.memory_space<vmem>>) attributes {dimension_semantics = [#tpu.dimension_semantics<parallel>], iteration_bounds = array<i64: 1>, scalar_prefetch = 0 : i64, scratch_operands = 0 : i64, tpu.core_type = #tpu.core_type<tc>, window_params = [{transform_indices = @transform_0, window_bounds = array<i64: 8, 16>}, {pipeline_mode = #tpu.pipeline_mode<synchronous>, transform_indices = @transform_1, window_bounds = array<i64: 48, 32>}, {pipeline_mode = #tpu.pipeline_mode<synchronous>, transform_indices = @transform_2, window_bounds = array<i64: 32, 128>}, {pipeline_mode = #tpu.pipeline_mode<synchronous>, transform_indices = @transform_3, window_bounds = array<i64: 80, 32>}, {pipeline_mode = #tpu.pipeline_mode<synchronous>, transform_indices = @transform_4, window_bounds = array<i64: 8, 128>}, {transform_indices = @transform_5, window_bounds = array<i64: 8, 128>}]} {
    %c0 = arith.constant 0 : index
    %c0_0 = arith.constant 0 : index
    %0 = vector.load %arg1[%c0, %c0_0] : memref<8x16xbf16, #tpu.memory_space<vmem>>, vector<8x16xbf16>
    %c0_1 = arith.constant 0 : index
    %c0_2 = arith.constant 0 : index
    %1 = vector.load %arg2[%c0_1, %c0_2] : memref<48x32xbf16, #tpu.memory_space<vmem>>, vector<16x32xbf16>
    %c16 = arith.constant 16 : index
    %c0_3 = arith.constant 0 : index
    %2 = vector.load %arg2[%c16, %c0_3] : memref<48x32xbf16, #tpu.memory_space<vmem>>, vector<32x32xbf16>
    %c0_4 = arith.constant 0 : index
    %c0_5 = arith.constant 0 : index
    %3 = vector.load %arg5[%c0_4, %c0_5] : memref<8x128xf32, #tpu.memory_space<vmem>>, vector<1x32xf32>
    %c1 = arith.constant 1 : index
    %c0_6 = arith.constant 0 : index
    %4 = vector.load %arg5[%c1, %c0_6] : memref<8x128xf32, #tpu.memory_space<vmem>>, vector<1x32xf32>
    %c2 = arith.constant 2 : index
    %c0_7 = arith.constant 0 : index
    %5 = vector.load %arg5[%c2, %c0_7] : memref<8x128xf32, #tpu.memory_space<vmem>>, vector<1x128xf32>
    %c3 = arith.constant 3 : index
    %c0_8 = arith.constant 0 : index
    %6 = vector.load %arg5[%c3, %c0_8] : memref<8x128xf32, #tpu.memory_space<vmem>>, vector<1x32xf32>
    %c4 = arith.constant 4 : index
    %c0_9 = arith.constant 0 : index
    %7 = vector.load %arg5[%c4, %c0_9] : memref<8x128xf32, #tpu.memory_space<vmem>>, vector<1x1xf32>
    %cst = arith.constant dense<0.000000e+00> : vector<8x32xf32>
    %8 = tpu.matmul %0, %1, %cst {dimension_numbers = #tpu.dot_dimension_numbers<[1], [0], [0], [1], [0, 0, 1, 1], [], []>} : vector<8x16xbf16>, vector<16x32xbf16>, vector<8x32xf32> -> vector<8x32xf32>
    %9 = vector.broadcast %3 : vector<1x32xf32> to vector<8x32xf32>
    %10 = arith.addf %8, %9 : vector<8x32xf32>
    %cst_10 = arith.constant 0.000000e+00 : f32
    %11 = vector.broadcast %cst_10 : f32 to vector<8x32xf32>
    %12 = arith.maximumf %10, %11 : vector<8x32xf32>
    %13 = arith.truncf %12 : vector<8x32xf32> to vector<8x32xbf16>
    %cst_11 = arith.constant dense<0.000000e+00> : vector<8x32xf32>
    %14 = tpu.matmul %13, %2, %cst_11 {dimension_numbers = #tpu.dot_dimension_numbers<[1], [0], [0], [1], [0, 0, 1, 1], [], []>} : vector<8x32xbf16>, vector<32x32xbf16>, vector<8x32xf32> -> vector<8x32xf32>
    %15 = vector.broadcast %4 : vector<1x32xf32> to vector<8x32xf32>
    %16 = arith.addf %14, %15 : vector<8x32xf32>
    %cst_12 = arith.constant 0.000000e+00 : f32
    %17 = vector.broadcast %cst_12 : f32 to vector<8x32xf32>
    %18 = arith.maximumf %16, %17 : vector<8x32xf32>
    %19 = arith.truncf %18 : vector<8x32xf32> to vector<8x32xbf16>
    %c0_13 = arith.constant 0 : index
    %c0_14 = arith.constant 0 : index
    %20 = vector.load %arg3[%c0_13, %c0_14] : memref<32x128xbf16, #tpu.memory_space<vmem>>, vector<32x128xbf16>
    %cst_15 = arith.constant dense<0.000000e+00> : vector<8x128xf32>
    %21 = tpu.matmul %19, %20, %cst_15 {dimension_numbers = #tpu.dot_dimension_numbers<[1], [0], [0], [1], [0, 0, 1, 1], [], []>} : vector<8x32xbf16>, vector<32x128xbf16>, vector<8x128xf32> -> vector<8x128xf32>
    %22 = vector.broadcast %5 : vector<1x128xf32> to vector<8x128xf32>
    %23 = arith.addf %21, %22 : vector<8x128xf32>
    %24 = vector.extract_strided_slice %23 {offsets = [0, 0], sizes = [8, 8], strides = [1, 1]} : vector<8x128xf32> to vector<8x8xf32>
    %cst_16 = arith.constant dense<0xFF800000> : vector<8xf32>
    %25 = vector.multi_reduction <maximumf>, %24, %cst_16 [1] : vector<8x8xf32> to vector<8xf32>
    %26 = vector.shape_cast %25 : vector<8xf32> to vector<8x1xf32>
    %27 = vector.broadcast %26 : vector<8x1xf32> to vector<8x8xf32>
    %28 = arith.subf %24, %27 : vector<8x8xf32>
    %29 = math.exp %28 : vector<8x8xf32>
    %cst_17 = arith.constant dense<0.000000e+00> : vector<8xf32>
    %30 = vector.multi_reduction <add>, %29, %cst_17 [1] : vector<8x8xf32> to vector<8xf32>
    %31 = vector.shape_cast %30 : vector<8xf32> to vector<8x1xf32>
    %32 = tpu.reciprocal %31 {approx = true} : vector<8x1xf32> -> vector<8x1xf32>
    %33 = vector.broadcast %32 : vector<8x1xf32> to vector<8x8xf32>
    %34 = arith.mulf %29, %33 : vector<8x8xf32>
    %35 = vector.extract_strided_slice %23 {offsets = [0, 8], sizes = [8, 1], strides = [1, 1]} : vector<8x128xf32> to vector<8x1xf32>
    %36 = vector.extract_strided_slice %23 {offsets = [0, 9], sizes = [8, 64], strides = [1, 1]} : vector<8x128xf32> to vector<8x64xf32>
    %cst_18 = arith.constant 0.000000e+00 : f32
    %37 = vector.broadcast %cst_18 : f32 to vector<8x64xf32>
    %38 = arith.maximumf %36, %37 : vector<8x64xf32>
    %c0_19 = arith.constant 0 : index
    %c0_20 = arith.constant 0 : index
    %39 = vector.load %arg4[%c0_19, %c0_20] : memref<80x32xbf16, #tpu.memory_space<vmem>>, vector<64x32xbf16>
    %40 = arith.truncf %38 : vector<8x64xf32> to vector<8x64xbf16>
    %cst_21 = arith.constant dense<0.000000e+00> : vector<8x32xf32>
    %41 = tpu.matmul %40, %39, %cst_21 {dimension_numbers = #tpu.dot_dimension_numbers<[1], [0], [0], [1], [0, 0, 1, 1], [], []>} : vector<8x64xbf16>, vector<64x32xbf16>, vector<8x32xf32> -> vector<8x32xf32>
    %42 = vector.broadcast %6 : vector<1x32xf32> to vector<8x32xf32>
    %43 = arith.addf %41, %42 : vector<8x32xf32>
    %cst_22 = arith.constant 0.000000e+00 : f32
    %44 = vector.broadcast %cst_22 : f32 to vector<8x32xf32>
    %45 = arith.maximumf %43, %44 : vector<8x32xf32>
    %c64 = arith.constant 64 : index
    %c0_23 = arith.constant 0 : index
    %46 = vector.load %arg4[%c64, %c0_23] : memref<80x32xbf16, #tpu.memory_space<vmem>>, vector<1x32xbf16>
    %47 = arith.extf %46 : vector<1x32xbf16> to vector<1x32xf32>
    %48 = vector.broadcast %47 : vector<1x32xf32> to vector<8x32xf32>
    %49 = arith.mulf %45, %48 : vector<8x32xf32>
    %cst_24 = arith.constant dense<0.000000e+00> : vector<8xf32>
    %50 = vector.multi_reduction <add>, %49, %cst_24 [1] : vector<8x32xf32> to vector<8xf32>
    %51 = vector.shape_cast %50 : vector<8xf32> to vector<8x1xf32>
    %52 = vector.broadcast %7 : vector<1x1xf32> to vector<8x1xf32>
    %53 = arith.addf %51, %52 : vector<8x1xf32>
    %54 = arith.truncf %34 : vector<8x8xf32> to vector<8x8xbf16>
    %c0_25 = arith.constant 0 : index
    %c0_26 = arith.constant 0 : index
    %55 = vector.load %arg6[%c0_25, %c0_26] : memref<8x128xbf16, #tpu.memory_space<vmem>>, vector<8x8xbf16>
    tpu.vector_store %arg6[%c0_25, %c0_26], %54 {strides = array<i32>} : memref<8x128xbf16, #tpu.memory_space<vmem>>, vector<8x8xbf16>,
    %56 = arith.truncf %35 : vector<8x1xf32> to vector<8x1xbf16>
    %c0_27 = arith.constant 0 : index
    %c8 = arith.constant 8 : index
    %57 = vector.load %arg6[%c0_27, %c8] : memref<8x128xbf16, #tpu.memory_space<vmem>>, vector<8x1xbf16>
    tpu.vector_store %arg6[%c0_27, %c8], %56 {strides = array<i32>} : memref<8x128xbf16, #tpu.memory_space<vmem>>, vector<8x1xbf16>,
    %58 = arith.truncf %53 : vector<8x1xf32> to vector<8x1xbf16>
    %c0_28 = arith.constant 0 : index
    %c9 = arith.constant 9 : index
    %59 = vector.load %arg6[%c0_28, %c9] : memref<8x128xbf16, #tpu.memory_space<vmem>>, vector<8x1xbf16>
    tpu.vector_store %arg6[%c0_28, %c9], %58 {strides = array<i32>} : memref<8x128xbf16, #tpu.memory_space<vmem>>, vector<8x1xbf16>,
    return
  }
  func.func @transform_0(%arg0: i32) -> (i32, i32) {
    %c0_i32 = arith.constant 0 : i32
    %c0_i32_0 = arith.constant 0 : i32
    return %arg0, %c0_i32 : i32, i32
  }
  func.func @transform_1(%arg0: i32) -> (i32, i32) {
    %c0_i32 = arith.constant 0 : i32
    %c0_i32_0 = arith.constant 0 : i32
    %c0_i32_1 = arith.constant 0 : i32
    return %c0_i32, %c0_i32_0 : i32, i32
  }
  func.func @transform_2(%arg0: i32) -> (i32, i32) {
    %c0_i32 = arith.constant 0 : i32
    %c0_i32_0 = arith.constant 0 : i32
    %c0_i32_1 = arith.constant 0 : i32
    return %c0_i32, %c0_i32_0 : i32, i32
  }
  func.func @transform_3(%arg0: i32) -> (i32, i32) {
    %c0_i32 = arith.constant 0 : i32
    %c0_i32_0 = arith.constant 0 : i32
    %c0_i32_1 = arith.constant 0 : i32
    return %c0_i32, %c0_i32_0 : i32, i32
  }
  func.func @transform_4(%arg0: i32) -> (i32, i32) {
    %c0_i32 = arith.constant 0 : i32
    %c0_i32_0 = arith.constant 0 : i32
    %c0_i32_1 = arith.constant 0 : i32
    return %c0_i32, %c0_i32_0 : i32, i32
  }
  func.func @transform_5(%arg0: i32) -> (i32, i32) {
    %c0_i32 = arith.constant 0 : i32
    %c0_i32_0 = arith.constant 0 : i32
    return %arg0, %c0_i32 : i32, i32
  }
}

</mosaic_0001>

<bundles_post_ra>
// kernel: tpu_custom_call.1
= control target key start
LH: loop header
LB: loop body
LE: loop exit
PB: predicated region body
PF: predicated region fallthrough
CT: control target
= control target key end

     0   :  { %vm41_vm0 = vcmask 130048   ;;  %s407_s0 = inlined_call_operand.vmem [shape: bf16[8,16], index: 0, kind: input, shape index: {}]   ;;  %s408_s1 = inlined_call_operand.vmem [shape: bf16[48,32], index: 1, kind: input, shape index: {}]   ;;  %s409_s2 = inlined_call_operand.vmem [shape: bf16[32,128], index: 2, kind: input, shape index: {}]   ;;  %s410_s3 = inlined_call_operand.vmem [shape: bf16[80,32], index: 3, kind: input, shape index: {}]   ;;  %s411_s4 = inlined_call_operand.vmem [shape: f32[8,128], index: 4, kind: input, shape index: {}]   ;;  %s412_s5 = inlined_call_operand.hbm [shape: bf16[8,128], index: 5, kind: output, shape index: {}]  }
   0x1   :  { %v271_v0 = vld [vmem:[%s408_s1] sm:$0xff] }
   0x2   :  { %v22_v1 = vld [vmem:[%s407_s0] sm:$0xf]  ;;  %52 = vmatpush.bf16.msra.mxu0 %v271_v0 }
   0x3   :  { %10 = vsyncpa [#allocation3], 0  ;;  %v273_v2 = vld [vmem:[%s408_s1 + $0x10] sm:$0xff]  ;;  %v272_v3 = vld [vmem:[%s408_s1 + $0x8] sm:$0xff]  ;;  %vm73_vm1 = vcmask 261120   ;;  %vm125_vm2 = vcmask 64512  }
   0x4   :  { %83 = vmatpush.bf16.msra.mxu1 %v273_v2  ;;  %v283_v4 = vld [vmem:[%s411_s4] ss:$0 sm:$0xff]  ;;  %v275_v10 = vld [vmem:[%s409_s2 + $0x8] sm:$0xff]  ;;  %v284_v12 = vld [vmem:[%s411_s4 + $0x1] ss:$0 sm:$0xff]  ;;  %vm175_vm3 = vcmask 523264  }
   0x5   :  { %235 = vmatmul.msk.bf16.vlgmr.msra.gmra.mxu0 %vm41_vm0, %v22_v1  ;;  %118 = vmatpush.bf16.msra.mxu2 %v275_v10  ;;  %v274_v11 = vld [vmem:[%s409_s2] sm:$0xff]  ;;  %s318_s2 = smov 119   ;;  %v279_v24 = vld [vmem:[%s410_s3 + $0x18] sm:$0xff]  ;;  %v278_v25 = vld [vmem:[%s410_s3 + $0x10] sm:$0xff]  ;;  %s319_s22 = smov 9   ;;  %vm203_vm4 = vcmask 60416  }
   0x6   :  { %v285_v18 = vld [vmem:[%s411_s4 + $0x2] ss:$0 sm:$0xff]  ;;  %183 = vmatpush.bf16.msra.mxu3 %v279_v24  ;;  %v277_v26 = vld [vmem:[%s410_s3 + $0x8] sm:$0xff]  ;;  %v193_v30 = vld [vmem:[%s410_s3 + $0x20] sm:$0x1]  ;;  %vm206_vm5 = vcmask 68672  }
   0x7   :  { %v276_v27 = vld [vmem:[%s410_s3] sm:$0xff]  ;;  %v194_v33 = vunpack.c.l.bf16 %v193_v30  ;;  %s320_s23 = smov [#allocation2]   ;;  %vm213_vm6 = vcmask 76872  }
   0x8   :  { %84 = vmatpush.bf16.msra.mxu1 %v272_v3  ;;  %v286_v32 = vld [vmem:[%s411_s4 + $0x3] ss:$0 sm:$0xff]  ;;  %v287_v45 = vld [vmem:[%s411_s4 + $0x4] ss:$0 sm:$0xff]  ;;  %s220_s24 = sshll.u32 %s320_s23, 4  ;;  %s222_s4 = sshll.u32 %s412_s5, 4  ;;  %s221_s24 = int_to_ptr.vmem [resolvable:$true] %s220_s24  ;;  %s223_s4 = int_to_ptr.hbm [resolvable:$true] %s222_s4 }
   0x9   :  { %119 = vmatpush.bf16.msra.mxu2 %v274_v11  ;;  %v195_v37 = vperm.slane %v194_v33, 0 }
   0xa   :  { %184 = vmatpush.bf16.msra.mxu3 %v278_v25 }
   0xe   :  { %185 = vmatpush.bf16.msra.mxu3 %v277_v26 }
  0x12   :  { %186 = vmatpush.bf16.msra.mxu3 %v276_v27 }
  0x82   :  { %v54_v5 = vpop.f32.mrf.mxu0 }
  0x83   :  { %v55_v6 = vadd.f32 %v283_v4, %v54_v5 }
  0x85   :  { %v58_v7 = vmax.f32 %v55_v6, 0.0 }
  0x87   :  { %v59_v8 = vpack.c.bf16 %v58_v7, %v58_v7 }
  0x89   :  { %244 = vmatmul.msk.bf16.vlgmr.msra.gmra.mxu1 %vm73_vm1, %v59_v8 }
  0x8a   :  { %v56_v9 = vpop.f32.mrf.mxu0 }
 0x106   :  { %v86_v13 = vpop.f32.mrf.mxu1 }
 0x107   :  { %v87_v14 = vadd.f32 %v284_v12, %v86_v13 }
 0x109   :  { %v90_v15 = vmax.f32 %v87_v14, 0.0 }
 0x10b   :  { %v91_v16 = vpack.c.bf16 %v90_v15, %v90_v15 }
 0x10d   :  { %253 = vmatmul.msk.bf16.vlgmr.msra.gmra.mxu2 %vm73_vm1, %v91_v16 }
 0x10e   :  { %v88_v17 = vpop.f32.mrf.mxu1 }
 0x190   :  { %v121_v19 = vpop.f32.mrf.mxu2 }
 0x191   :  { %v122_v20 = vadd.f32 %v285_v18, %v121_v19 }
 0x193   :  { %v137_v21 = vmax.f32 %v122_v20, 0.0  ;;  %v126_v28 = vsel %vm125_vm2, %v122_v20, -inf  ;;  %v205_v53 = vpack.c.bf16 %v122_v20, %v122_v20 }
 0x195   :  { %v146_v22 = vpack.c.bf16 %v137_v21, %v137_v21 }
 0x197   :  { %149 = vrot.lane.b32.xlu0 %v146_v22, %s318_s2 }
 0x198   :  { %v123_v23 = vpop.f32.mrf.mxu2 }
 0x1c1   :  { %127 = vmax.xlane.f32.xlu0 %v126_v28 }
 0x209   :  { %v150_v29 = vpop.permute.xlu0 %149 }
 0x20a   :  { %270 = vmatmul.msk.bf16.vlgmr.msra.gmra.mxu3 %vm175_vm3, %v150_v29 }
 0x234   :  { %v128_v31 = vpop.xlane.xlu0 %127 }
 0x235   :  { %v129_v34 = vsub.f32 %v122_v20, %v128_v31 }
 0x237   :  { %v130_v38 = vmul.f32 1.442695, %v129_v34 }
 0x239   :  { %288 = vpow2.f32 %v130_v38 }
 0x23f   :  { %v289_v43 = vpop.eup %288 }
 0x240   :  { %v132_v44 = vsel %vm125_vm2, %v289_v43, 0.0 }
 0x28d   :  { %v188_v35 = vpop.f32.mrf.mxu3 }
 0x28e   :  { %v189_v36 = vadd.f32 %v286_v32, %v188_v35 }
 0x290   :  { %v192_v39 = vmax.f32 %v189_v36, 0.0 }
 0x292   :  { %v196_v40 = vmul.f32 %v195_v37, %v192_v39 }
 0x294   :  { %v197_v41 = vsel %vm73_vm1, %v196_v40, 0.0 }
 0x295   :  { %v190_v42 = vpop.f32.mrf.mxu3  ;;  %198 = vadd.xlane.f32.xlu1 %v197_v41 }
 0x29d   :  { %133 = vadd.xlane.f32.xlu1 %v132_v44 }
 0x308   :  { %v199_v46 = vpop.xlane.xlu1 %198 }
 0x309   :  { %v201_v47 = vadd.f32 %v287_v45, %v199_v46 }
 0x30b   :  { %v208_v48 = vpack.c.bf16 %v201_v47, %v201_v47 }
 0x30d   :  { %210 = vrot.lane.b32.xlu2 %v208_v48, %s319_s22 }
 0x310   :  { %v134_v49 = vpop.xlane.xlu1 %133 }
 0x311   :  { %290 = vrcp.f32 %v134_v49 }
 0x317   :  { %v291_v50 = vpop.eup %290 }
 0x318   :  { %v136_v51 = vmul.f32 %v291_v50, %v289_v43 }
 0x31a   :  { %v202_v52 = vpack.c.bf16 %v136_v51, %v136_v51 }
 0x31c   :  { %204 = vst.msk [vmem:[#allocation2] sm:$0xf] %vm203_vm4, %v202_v52 }
 0x31d   :  { %207 = vst.msk [vmem:[#allocation2] sm:$0xf] %vm206_vm5, %v205_v53 }
 0x367   :  { %v211_v54 = vpop.permute.xlu2 %210 }
 0x368   :  { %214 = vst.msk [vmem:[#allocation2] sm:$0xf] %vm213_vm6, %v211_v54 }
 0x369   :  { %225 = dma.vmem_to_hbm [thread:$0]  %s221_s24, 64, %s223_s4, [#allocation3]  }
 0x36a   :  { %316 = dma.done.wait [#allocation3], 64  }
 0x36b   :  { %317 = vsyncadd [#allocation3], 4294967232 }
 0x36c   :  { %230 = vsyncpa [#allocation3], 1 }

</bundles_post_ra>
